<compile_context>
chip_gen: v6e
topology: v6e:2x2x1
jax: 0.10.0
libtpu: 0.0.40
codegen_flags: <defaults>
</compile_context>

<pallas_src>
import jax
import jax.numpy as jnp
from jax.experimental import pallas as pl
from jax.experimental.pallas import tpu as pltpu


def _round_up(x, m):
    return ((x + m - 1) // m) * m


def vit_pooler_kernel(x_ref, wt_ref, b_ref, out_ref):
    # Single-shot GEMM tile: full-H contraction on the MXU with f32
    # accumulation, then fused bias + tanh and a lane-dense store.
    acc = jnp.dot(x_ref[...], wt_ref[...], preferred_element_type=jnp.float32)
    out_ref[...] = jnp.tanh(acc + b_ref[...].astype(jnp.float32)).astype(out_ref.dtype)


def vit_pooler(hidden_states, weight, bias):
    """ViTPooler forward: tanh(hidden_states[:, 0] @ weight.T + bias).

    hidden_states: (B, S, H); weight: (H, H) in nn.Linear (out, in) layout;
    bias: (H,).  Returns (B, H).
    """
    B, S, H = hidden_states.shape
    out_dtype = hidden_states.dtype

    # Slice the CLS token in the wrapper: only a (B, H) slab reaches the kernel.
    cls = hidden_states[:, 0, :]

    # Pre-transpose W once so the kernel does a plain (M,K)@(K,N) contraction.
    wt = weight.T  # (H_in, H_out)

    # Pad batch only to the native sublane multiple (8 for 32-bit, 16 for
    # 16-bit activations) — never up to the tile size.
    sub = 16 if jnp.dtype(out_dtype).itemsize < 4 else 8
    Bp = _round_up(max(B, 1), sub)
    if Bp != B:
        cls = jnp.pad(cls, ((0, Bp - B), (0, 0)))

    # M tile: the whole padded batch when small (single M block -> weight is
    # streamed from HBM exactly once), otherwise a divisor of Bp so there is
    # no extra padding.
    if Bp <= 512:
        tm = Bp
    else:
        tm = sub
        for cand in (512, 256, 128, 64, 32, 16, 8):
            if cand % sub == 0 and Bp % cand == 0:
                tm = cand
                break

    # N tile: prefer two column tiles (keeps both v7x TensorCores busy) when H
    # splits on a 128-lane boundary; shrink further only if the resident,
    # double-buffered working set would blow the scoped-VMEM budget.
    def footprint(tn):
        xs = jnp.dtype(cls.dtype).itemsize
        ws = jnp.dtype(wt.dtype).itemsize
        os_ = jnp.dtype(out_dtype).itemsize
        return 2 * (tm * H * xs + H * tn * ws + tm * tn * os_) + 2 * tn * 4

    budget = 40 * 1024 * 1024
    if H % 256 == 0:
        cands = [H // 2]
        while cands[-1] % 256 == 0 and cands[-1] > 128:
            cands.append(cands[-1] // 2)
    else:
        cands = [H]
    tn = cands[-1]
    for cand in cands:
        if footprint(cand) <= budget:
            tn = cand
            break

    bias2d = bias.reshape(1, H)

    n_m = Bp // tm
    n_n = H // tn

    # Grid = (N, M) with N outermost: the weight-column block index only
    # changes on the outer axis, so each W column tile is fetched from HBM
    # exactly once regardless of how many M tiles there are.
    grid = (n_n, n_m)

    vmem_limit = int(min(max(footprint(tn) + (4 << 20), 16 << 20), 48 << 20))

    out = pl.pallas_call(
        vit_pooler_kernel,
        out_shape=jax.ShapeDtypeStruct((Bp, H), out_dtype),
        grid_spec=pltpu.PrefetchScalarGridSpec(
            num_scalar_prefetch=0,
            grid=grid,
            in_specs=[
                # CLS activations: (tm, H) — full contraction width per tile.
                pl.BlockSpec((tm, H), lambda j, i: (i, 0)),
                # Pre-transposed weight: (H, tn), resident per column tile.
                pl.BlockSpec((H, tn), lambda j, i: (0, j)),
                # Bias: (1, tn), follows the column tile only.
                pl.BlockSpec((1, tn), lambda j, i: (0, j)),
            ],
            out_specs=pl.BlockSpec((tm, tn), lambda j, i: (i, j)),
        ),
        compiler_params=pltpu.CompilerParams(
            dimension_semantics=("parallel", "parallel"),
            vmem_limit_bytes=vmem_limit,
        ),
    )(cls, wt, bias2d)

    return out[:B]


if __name__ == "__main__":
    # Small shapes: batch=2, seq=8 (first token is CLS), hidden=32.
    B, S, H = 2, 8, 32

    key = jax.random.PRNGKey(0)
    k_hs, k_w, k_b = jax.random.split(key, 3)

    hidden_states = jax.random.normal(k_hs, (B, S, H), dtype=jnp.float32)
    # Deterministic synthetic nn.Linear parameters (shapes per module __init__).
    weight = jax.random.normal(k_w, (H, H), dtype=jnp.float32) * 0.02
    bias = jax.random.normal(k_b, (H,), dtype=jnp.float32) * 0.02

    out = jax.block_until_ready(vit_pooler(hidden_states, weight, bias))

    # Reference check (plain JAX), same math as the PyTorch forward.
    ref = jnp.tanh(hidden_states[:, 0] @ weight.T + bias)
    assert out.shape == (B, H)
    assert jnp.allclose(out, ref, atol=1e-5, rtol=1e-5)

    print("KERNEL_OK")
</pallas_src>

<mosaic_0001>
module attributes {stable_mosaic.version = 11 : i64} {
  func.func @vit_pooler_kernel(%arg0: i32, %arg1: i32, %arg2: memref<8x32xf32, #tpu.memory_space<vmem>>, %arg3: memref<32x32xf32, #tpu.memory_space<vmem>>, %arg4: memref<1x32xf32, #tpu.memory_space<vmem>>, %arg5: memref<8x32xf32, #tpu.memory_space<vmem>>) attributes {dimension_semantics = [#tpu.dimension_semantics<parallel>, #tpu.dimension_semantics<parallel>], iteration_bounds = array<i64: 1, 1>, scalar_prefetch = 0 : i64, scratch_operands = 0 : i64, tpu.core_type = #tpu.core_type<tc>, window_params = [{transform_indices = @transform_0, window_bounds = array<i64: 8, 32>}, {transform_indices = @transform_1, window_bounds = array<i64: 32, 32>}, {transform_indices = @transform_2, window_bounds = array<i64: 1, 32>}, {transform_indices = @transform_3, window_bounds = array<i64: 8, 32>}]} {
    %c0 = arith.constant 0 : index
    %c0_0 = arith.constant 0 : index
    %0 = vector.load %arg2[%c0, %c0_0] : memref<8x32xf32, #tpu.memory_space<vmem>>, vector<8x32xf32>
    %c0_1 = arith.constant 0 : index
    %c0_2 = arith.constant 0 : index
    %1 = vector.load %arg3[%c0_1, %c0_2] : memref<32x32xf32, #tpu.memory_space<vmem>>, vector<32x32xf32>
    %cst = arith.constant dense<0.000000e+00> : vector<8x32xf32>
    %2 = tpu.matmul %0, %1, %cst {dimension_numbers = #tpu.dot_dimension_numbers<[1], [0], [0], [1], [0, 0, 1, 1], [], []>} : vector<8x32xf32>, vector<32x32xf32>, vector<8x32xf32> -> vector<8x32xf32>
    %c0_3 = arith.constant 0 : index
    %c0_4 = arith.constant 0 : index
    %3 = vector.load %arg4[%c0_3, %c0_4] : memref<1x32xf32, #tpu.memory_space<vmem>>, vector<1x32xf32>
    %4 = vector.broadcast %3 : vector<1x32xf32> to vector<8x32xf32>
    %5 = arith.addf %2, %4 : vector<8x32xf32>
    %6 = math.tanh %5 : vector<8x32xf32>
    %c0_5 = arith.constant 0 : index
    %c0_6 = arith.constant 0 : index
    %7 = vector.load %arg5[%c0_5, %c0_6] : memref<8x32xf32, #tpu.memory_space<vmem>>, vector<8x32xf32>
    tpu.vector_store %arg5[%c0_5, %c0_6], %6 {strides = array<i32>} : memref<8x32xf32, #tpu.memory_space<vmem>>, vector<8x32xf32>,
    return
  }
  func.func @transform_0(%arg0: i32, %arg1: i32) -> (i32, i32) {
    %c0_i32 = arith.constant 0 : i32
    %c0_i32_0 = arith.constant 0 : i32
    return %arg1, %c0_i32 : i32, i32
  }
  func.func @transform_1(%arg0: i32, %arg1: i32) -> (i32, i32) {
    %c0_i32 = arith.constant 0 : i32
    %c0_i32_0 = arith.constant 0 : i32
    return %c0_i32, %arg0 : i32, i32
  }
  func.func @transform_2(%arg0: i32, %arg1: i32) -> (i32, i32) {
    %c0_i32 = arith.constant 0 : i32
    %c0_i32_0 = arith.constant 0 : i32
    return %c0_i32, %arg0 : i32, i32
  }
  func.func @transform_3(%arg0: i32, %arg1: i32) -> (i32, i32) {
    %c0_i32 = arith.constant 0 : i32
    return %arg1, %arg0 : i32, i32
  }
}

</mosaic_0001>

<bundles_post_ra>
// kernel: tpu_custom_call.1
= control target key start
LH: loop header
LB: loop body
LE: loop exit
PB: predicated region body
PF: predicated region fallthrough
CT: control target
= control target key end

     0   :  { %8 = vsyncpa [#allocation3], 0  ;;  %s277_s0 = inlined_call_operand.hbm [shape: f32[8,32], index: 0, kind: input, shape index: {}]   ;;  %s278_s1 = inlined_call_operand.hbm [shape: f32[32,32], index: 1, kind: input, shape index: {}]   ;;  %s279_s2 = inlined_call_operand.vmem [shape: f32[1,32], index: 2, kind: input, shape index: {}]   ;;  %s280_s3 = inlined_call_operand.hbm [shape: f32[8,32], index: 3, kind: output, shape index: {}]  }
   0x1   :  { %9 = vsyncpa [#allocation6], 0 }
   0x2   :  { %10 = vsyncpa [#allocation4], 0  ;;  %s238_s12 = smov [#allocation2]   ;;  %s239_s14 = smov [#allocation5]  }
   0x3   :  { %s17_s13 = sshll.u32 %s238_s12, 4  ;;  %s26_s15 = sshll.u32 %s239_s14, 4  ;;  %s18_s13 = int_to_ptr.vmem [resolvable:$true] %s17_s13  ;;  %s27_s15 = int_to_ptr.vmem [resolvable:$true] %s26_s15 }
   0x4   :  { %s180_s16 = scalar_lea.vmem %s18_s13, 128  ;;  %p185_p1 = scmp.lt.s32.totalorder %s18_s13, %s18_s13 }
   0x5   :  { %p181_p0 = scmp.ne.s32.totalorder %s18_s13, %s180_s16  ;;  %p186_p2 = scmp.lt.s32.totalorder %s180_s16, %s180_s16 }
   0x7   :  { %p187_p3 = por %p186_p2, %p185_p1 }
   0x9   :  { %p188_p4 = pnand %p187_p3, %p181_p0 }
   0xb   :  { %191 = shalt.err (!%p188_p4)
}
   0xc   :  { %20 = dma.hbm_to_vmem [thread:$0]  %s277_s0, 128, %s18_s13, [#allocation3]  }
   0xd   :  { %s200_s19 = scalar_lea.vmem %s27_s15, 512  ;;  %p205_p6 = scmp.lt.s32.totalorder %s27_s15, %s27_s15 }
   0xe   :  { %p201_p5 = scmp.ne.s32.totalorder %s27_s15, %s200_s19  ;;  %p206_p7 = scmp.lt.s32.totalorder %s200_s19, %s200_s19 }
  0x10   :  { %p207_p8 = por %p206_p7, %p205_p6 }
  0x12   :  { %p208_p9 = pnand %p207_p8, %p201_p5 }
  0x14   :  { %211 = shalt.err (!%p208_p9)
}
  0x15   :  { %s240_s20 = smov 128   ;;  %s241_s21 = smov 8  }
  0x16   :  { %32 = dma.hbm_to_vmem [thread:$0]  %s278_s1, 512, %s27_s15, [#allocation6], %s240_s20, %s240_s20, %s241_s21  }
  0x17   :  { %232 = dma.done.wait [#allocation3], 128  }
  0x18   :  { %233 = vsyncadd [#allocation3], 4294967168 }
  0x19   :  { %234 = dma.done.wait [#allocation6], 512  }
  0x1a   :  { %235 = vsyncadd [#allocation6], 4294966784  ;;  %v242_v0 = vmov 0.0   ;;  %vm243_vm0 = vmmov 0   ;;  %v45_v1 = vld [vmem:[#allocation5 + $0x18] sm:$0xff]  ;;  %v44_v2 = vld [vmem:[#allocation5 + $0x10] sm:$0xff] }
  0x1b   :  { %152 = vmatprep.subr.mxu0 %v242_v0  ;;  %160 = vmatprep.mubr.msk.f32.mxu0 %vm243_vm0, %v242_v0  ;;  %v43_v3 = vld [vmem:[#allocation5 + $0x8] sm:$0xff]  ;;  %v42_v4 = vld [vmem:[#allocation5] sm:$0xff]  ;;  %v41_v5 = vld [vmem:[#allocation2] sm:$0xff]  ;;  %vm53_vm1 = vcmask 261120   ;;  %s244_s24 = smov [#allocation7]  }
  0x1c   :  { %153 = vmatpush3.msra.mxu0 %v45_v1  ;;  %v145_v6 = vld [vmem:[%s279_s2] ss:$0 sm:$0xff]  ;;  %s135_s25 = sshll.u32 %s244_s24, 4  ;;  %s136_s25 = int_to_ptr.vmem [resolvable:$true] %s135_s25 }
  0x1d   :  { %154 = vmatprep.subr.mxu0 %v242_v0  ;;  %s212_s26 = scalar_lea.vmem %s136_s25, 128  ;;  %p217_p11 = scmp.lt.s32.totalorder %s136_s25, %s136_s25 }
  0x1e   :  { %155 = vmatpush3.msra.mxu0 %v44_v2  ;;  %p213_p10 = scmp.ne.s32.totalorder %s136_s25, %s212_s26  ;;  %p218_p12 = scmp.lt.s32.totalorder %s212_s26, %s212_s26 }
  0x1f   :  { %156 = vmatprep.subr.mxu0 %v242_v0 }
  0x20   :  { %157 = vmatpush3.msra.mxu0 %v43_v3  ;;  %p219_p13 = por %p218_p12, %p217_p11 }
  0x21   :  { %158 = vmatprep.subr.mxu0 %v242_v0 }
  0x22   :  { %159 = vmatpush3.msra.mxu0 %v42_v4  ;;  %p220_p0 = pnand %p219_p13, %p213_p10 }
  0x23   :  { %161 = vmatmul.mubr.msk.f32.vlgmr.msra.gmra.mxu0 %vm53_vm1, %v41_v5 }
  0xe3   :  { %v123_v7 = vpop.f32.mrf.mxu0 }
  0xe4   :  { %v124_v8 = vadd.f32 %v145_v6, %v123_v7 }
  0xe5   :  { %v162_v9 = vpop.f32.mrf.mxu0 }
  0xe6   :  { %170 = vtanh.f32 %v124_v8 }
  0xf3   :  { %v171_v10 = vpop.eup %170 }
  0xf4   :  { %128 = vst.msk [vmem:[#allocation7] sm:$0xff] %vm53_vm1, %v171_v10 }
  0xf5   :  { %223 = shalt.err (!%p220_p0)
}
  0xf6   :  { %138 = dma.vmem_to_hbm [thread:$0]  %s136_s25, 128, %s280_s3, [#allocation4]  }
  0xf7   :  { %236 = dma.done.wait [#allocation4], 128  }
  0xf8   :  { %237 = vsyncadd [#allocation4], 4294967168 }
  0xf9   :  { %142 = vsyncpa [#allocation3], 1 }
  0xfa   :  { %143 = vsyncpa [#allocation6], 1 }
  0xfb   :  { %144 = vsyncpa [#allocation4], 1 }

</bundles_post_ra>
